<compile_context>
chip_gen: v7x
topology: tpu7x:2x2x1
jax: 0.10.0
libtpu: 0.0.40
codegen_flags: <defaults>
</compile_context>

<pallas_src>
import jax
import jax.numpy as jnp
from jax.experimental import pallas as pl
from jax.experimental.pallas import tpu as pltpu

BN_EPS = 1e-5


# ------------------------------- Pallas kernel ------------------------------ #

def _bn_relu(y, g, b):
    """Training-mode BatchNorm (biased batch var, two-pass) + ReLU.

    y: (C, M)   g, b: (C, 1).  Stats are per row (= per channel) over M, so
    row-stacking several BN groups into one call is exact.
    """
    mean = jnp.mean(y, axis=1, keepdims=True)            # XLU lane reduce
    centered = y - mean
    var = jnp.mean(centered * centered, axis=1, keepdims=True)
    scale = g * jax.lax.rsqrt(var + BN_EPS)               # EUP rsqrt (free slot)
    return jnp.maximum(centered * scale + b, 0.0)


def _downsampling_kernel(cols_ref, lhs1_ref, wout_ref, bn_ref, o_ref):
    # cols_ref: (9C, M)  -- 9 taps of the shared 3x3/stride-s/pad-1 window,
    #                       rows ordered tap-major (t = kh*3+kw), M on lanes.
    # lhs1_ref: (2C, 9C) -- [tile(W11/9, 9) ; W33 as (C, 9C)]
    # wout_ref: (2C, 2C) -- 1x1 concat-conv weight
    # bn_ref:   (2C, 4)  -- columns [g12, b12, g3, b3]
    # o_ref:    (2C, M)

    # Branch 1 (avgpool->conv11) and branch 2 (conv33) in one wide-K matmul:
    # rows 0..C-1 of y12 are y1, rows C..2C-1 are y2.
    y12 = jnp.dot(lhs1_ref[...], cols_ref[...],
                  preferred_element_type=jnp.float32)      # (2C, M)

    # Single BN+ReLU over both branches (per-channel stats are independent).
    p12 = _bn_relu(y12, bn_ref[:, 0:1], bn_ref[:, 1:2])    # (2C, M) == cat(p1, p2)

    # conv11_out on the channel concat, then BN+ReLU.
    y3 = jnp.dot(wout_ref[...], p12,
                 preferred_element_type=jnp.float32)       # (2C, M)
    o_ref[...] = _bn_relu(y3, bn_ref[:, 2:3], bn_ref[:, 3:4])  # lane-dense store


def _full(shape):
    zeros = (0,) * len(shape)
    return pl.BlockSpec(shape, lambda i, _z=zeros: _z)


# --------------------------------- wrapper ---------------------------------- #

def downsampling_forward(x_nchw, params, d):
    """Downsampling.forward.  x_nchw: (N, Cin, H, W) float32;  stride = d + 1."""
    stride = d + 1                       # mirrors `d += 1` in __init__
    w11, g1, b1, w33, g2, b2, wout, g3, b3 = params
    n, cin, h, w = x_nchw.shape
    cout = 2 * cin
    ho = (h + 2 - 3) // stride + 1
    wo = (w + 2 - 3) // stride + 1
    m = n * ho * wo

    # --- layout plumbing (plain JAX; XLA fuses it into one pad/gather fusion) ---
    # One zero-padded input shared by the avg-pool and the 3x3-conv windows;
    # taps land directly in the (9C, M) row order the packed LHS expects.
    xp = jnp.pad(x_nchw, ((0, 0), (0, 0), (1, 1), (1, 1)))
    taps = []
    for kh in range(3):
        for kw in range(3):
            tap = jax.lax.slice(
                xp, (0, 0, kh, kw),
                (n, cin, kh + stride * (ho - 1) + 1, kw + stride * (wo - 1) + 1),
                (1, 1, stride, stride))                         # (N, C, Ho, Wo)
            taps.append(jnp.transpose(tap, (1, 0, 2, 3)).reshape(cin, m))
    cols = jnp.concatenate(taps, axis=0)                        # (9C, M), M on lanes
    # TODO(synk): for large inputs move this gather in-kernel (padded-x block +
    # pl.ds strided slices, M-tiled "parallel" grid with cross-tile BN sum/sumsq
    # accumulators + pl.when finalize) to drop the 9x window duplication in HBM
    # and fill both v7x TensorCores; at this 18 KB size it is irrelevant.

    # Weight / BN-parameter packing.  Pure constants once weights are static
    # (jit constant-folds these per call; hoist out of the per-step path when
    # this block is embedded in a full model).
    w11_m = w11.reshape(cin, cin)
    # row o, col t*C + i  ->  w33[o, i, kh, kw]  with  t = kh*3 + kw
    w33_cols = jnp.transpose(w33, (0, 2, 3, 1)).reshape(cin, 9 * cin)
    lhs1 = jnp.concatenate(
        [jnp.tile(w11_m * (1.0 / 9.0), (1, 9)), w33_cols], axis=0)   # (2C, 9C)
    wout_m = wout.reshape(cout, cout)
    bn_pack = jnp.stack([jnp.concatenate([g1, g2]),
                         jnp.concatenate([b1, b2]),
                         g3, b3], axis=1)                            # (2C, 4)

    out_cm = pl.pallas_call(
        _downsampling_kernel,
        out_shape=jax.ShapeDtypeStruct((cout, m), jnp.float32),
        grid=(1,),
        in_specs=[_full((9 * cin, m)), _full((cout, 9 * cin)),
                  _full((cout, cout)), _full((cout, 4))],
        out_specs=_full((cout, m)),
        compiler_params=pltpu.CompilerParams(
            dimension_semantics=("arbitrary",)),
    )(cols, lhs1, wout_m, bn_pack)
    # TODO(synk): at realistic channel counts (C >= 64) cast cols/lhs1/wout to
    # bf16 (keep preferred_element_type=f32) for the native 256-wide MXU path.

    # (2C, M) with M ordered (n, ho, wo)  ->  NCHW  (drop when the consumer is
    # another fused lane-dense block).
    return out_cm.reshape(cout, n, ho, wo).transpose(1, 0, 2, 3)


# ----------------------------- pure-JAX reference --------------------------- #

def _ref_forward(x_nchw, params, d):
    stride = d + 1
    w11, g1, b1, w33, g2, b2, wout, g3, b3 = params

    def conv(x, wgt, s, pad):
        return jax.lax.conv_general_dilated(
            x, wgt, (s, s), ((pad, pad), (pad, pad)),
            dimension_numbers=("NCHW", "OIHW", "NCHW"))

    def bn(y, g, b):
        mean = jnp.mean(y, axis=(0, 2, 3), keepdims=True)
        var = jnp.mean(jnp.square(y - mean), axis=(0, 2, 3), keepdims=True)
        yhat = (y - mean) * jax.lax.rsqrt(var + BN_EPS)
        return yhat * g.reshape(1, -1, 1, 1) + b.reshape(1, -1, 1, 1)

    # AvgPool2d(3, stride, padding=1), count_include_pad=True -> always divide by 9
    pooled = jax.lax.reduce_window(
        x_nchw, 0.0, jax.lax.add, (1, 1, 3, 3), (1, 1, stride, stride),
        [(0, 0), (0, 0), (1, 1), (1, 1)]) / 9.0

    p1 = jax.nn.relu(bn(conv(pooled, w11, 1, 0), g1, b1))
    p2 = jax.nn.relu(bn(conv(x_nchw, w33, stride, 1), g2, b2))
    z = jnp.concatenate([p1, p2], axis=1)
    return jax.nn.relu(bn(conv(z, wout, 1, 0), g3, b3))


# ------------------------------------ main ----------------------------------- #

if __name__ == "__main__":
    # PyTorch: Downsampling(ch_in=4, d=1) on x of shape (2, 4, 16, 16) NCHW.
    # __init__ does d += 1, so the spatial stride is 2 -> output (2, 8, 8, 8).
    N, CIN, H, W = 2, 4, 16, 16
    D = 1
    COUT = 2 * CIN

    key = jax.random.PRNGKey(0)
    ks = jax.random.split(key, 10)
    x = jax.random.normal(ks[0], (N, CIN, H, W), jnp.float32)

    w11 = jax.random.normal(ks[1], (CIN, CIN, 1, 1), jnp.float32) * (1.0 / CIN) ** 0.5
    w33 = jax.random.normal(ks[2], (CIN, CIN, 3, 3), jnp.float32) * (1.0 / (9 * CIN)) ** 0.5
    wout = jax.random.normal(ks[3], (COUT, COUT, 1, 1), jnp.float32) * (1.0 / COUT) ** 0.5
    g1 = 1.0 + 0.1 * jax.random.normal(ks[4], (CIN,), jnp.float32)
    b1 = 0.1 * jax.random.normal(ks[5], (CIN,), jnp.float32)
    g2 = 1.0 + 0.1 * jax.random.normal(ks[6], (CIN,), jnp.float32)
    b2 = 0.1 * jax.random.normal(ks[7], (CIN,), jnp.float32)
    g3 = 1.0 + 0.1 * jax.random.normal(ks[8], (COUT,), jnp.float32)
    b3 = 0.1 * jax.random.normal(ks[9], (COUT,), jnp.float32)
    params = (w11, g1, b1, w33, g2, b2, wout, g3, b3)

    fwd = jax.jit(downsampling_forward, static_argnums=2)
    out = jax.block_until_ready(fwd(x, params, D))
    ref = jax.block_until_ready(_ref_forward(x, params, D))

    assert out.shape == ref.shape == (N, COUT, H // (D + 1), W // (D + 1)), (out.shape, ref.shape)
    max_err = float(jnp.max(jnp.abs(out - ref)))
    assert jnp.allclose(out, ref, atol=1e-3, rtol=1e-3), max_err
    print("KERNEL_OK")
</pallas_src>

<mosaic_0001>
module attributes {stable_mosaic.version = 11 : i64} {
  func.func @_downsampling_kernel(%arg0: i32, %arg1: memref<36x128xf32, #tpu.memory_space<vmem>>, %arg2: memref<8x36xf32, #tpu.memory_space<vmem>>, %arg3: memref<8x8xf32, #tpu.memory_space<vmem>>, %arg4: memref<8x4xf32, #tpu.memory_space<vmem>>, %arg5: memref<8x128xf32, #tpu.memory_space<vmem>>) attributes {dimension_semantics = [#tpu.dimension_semantics<arbitrary>], iteration_bounds = array<i64: 1>, scalar_prefetch = 0 : i64, scratch_operands = 0 : i64, tpu.core_type = #tpu.core_type<tc>, window_params = [{pipeline_mode = #tpu.pipeline_mode<synchronous>, transform_indices = @transform_0, window_bounds = array<i64: 36, 128>}, {pipeline_mode = #tpu.pipeline_mode<synchronous>, transform_indices = @transform_1, window_bounds = array<i64: 8, 36>}, {pipeline_mode = #tpu.pipeline_mode<synchronous>, transform_indices = @transform_2, window_bounds = array<i64: 8, 8>}, {pipeline_mode = #tpu.pipeline_mode<synchronous>, transform_indices = @transform_3, window_bounds = array<i64: 8, 4>}, {pipeline_mode = #tpu.pipeline_mode<synchronous>, transform_indices = @transform_4, window_bounds = array<i64: 8, 128>}]} {
    %c0 = arith.constant 0 : index
    %c0_0 = arith.constant 0 : index
    %0 = vector.load %arg2[%c0, %c0_0] : memref<8x36xf32, #tpu.memory_space<vmem>>, vector<8x36xf32>
    %c0_1 = arith.constant 0 : index
    %c0_2 = arith.constant 0 : index
    %1 = vector.load %arg1[%c0_1, %c0_2] : memref<36x128xf32, #tpu.memory_space<vmem>>, vector<36x128xf32>
    %cst = arith.constant dense<0.000000e+00> : vector<8x128xf32>
    %2 = tpu.matmul %0, %1, %cst {dimension_numbers = #tpu.dot_dimension_numbers<[1], [0], [0], [1], [0, 0, 1, 1], [], []>} : vector<8x36xf32>, vector<36x128xf32>, vector<8x128xf32> -> vector<8x128xf32>
    %c0_3 = arith.constant 0 : index
    %c0_4 = arith.constant 0 : index
    %3 = vector.load %arg4[%c0_3, %c0_4] : memref<8x4xf32, #tpu.memory_space<vmem>>, vector<8x1xf32>
    %c0_5 = arith.constant 0 : index
    %c1 = arith.constant 1 : index
    %4 = vector.load %arg4[%c0_5, %c1] : memref<8x4xf32, #tpu.memory_space<vmem>>, vector<8x1xf32>
    %cst_6 = arith.constant dense<0.000000e+00> : vector<8xf32>
    %5 = vector.multi_reduction <add>, %2, %cst_6 [1] : vector<8x128xf32> to vector<8xf32>
    %6 = vector.shape_cast %5 : vector<8xf32> to vector<8x1xf32>
    %cst_7 = arith.constant 1.280000e+02 : f32
    %7 = vector.broadcast %cst_7 : f32 to vector<8x1xf32>
    %8 = arith.divf %6, %7 : vector<8x1xf32>
    %9 = vector.broadcast %8 : vector<8x1xf32> to vector<8x128xf32>
    %10 = arith.subf %2, %9 : vector<8x128xf32>
    %11 = arith.mulf %10, %10 : vector<8x128xf32>
    %cst_8 = arith.constant dense<0.000000e+00> : vector<8xf32>
    %12 = vector.multi_reduction <add>, %11, %cst_8 [1] : vector<8x128xf32> to vector<8xf32>
    %13 = vector.shape_cast %12 : vector<8xf32> to vector<8x1xf32>
    %cst_9 = arith.constant 1.280000e+02 : f32
    %14 = vector.broadcast %cst_9 : f32 to vector<8x1xf32>
    %15 = arith.divf %13, %14 : vector<8x1xf32>
    %cst_10 = arith.constant 9.99999974E-6 : f32
    %16 = vector.broadcast %cst_10 : f32 to vector<8x1xf32>
    %17 = arith.addf %15, %16 : vector<8x1xf32>
    %18 = math.rsqrt %17 : vector<8x1xf32>
    %19 = arith.mulf %3, %18 : vector<8x1xf32>
    %20 = vector.broadcast %19 : vector<8x1xf32> to vector<8x128xf32>
    %21 = arith.mulf %10, %20 : vector<8x128xf32>
    %22 = vector.broadcast %4 : vector<8x1xf32> to vector<8x128xf32>
    %23 = arith.addf %21, %22 : vector<8x128xf32>
    %cst_11 = arith.constant 0.000000e+00 : f32
    %24 = vector.broadcast %cst_11 : f32 to vector<8x128xf32>
    %25 = arith.maximumf %23, %24 : vector<8x128xf32>
    %c0_12 = arith.constant 0 : index
    %c0_13 = arith.constant 0 : index
    %26 = vector.load %arg3[%c0_12, %c0_13] : memref<8x8xf32, #tpu.memory_space<vmem>>, vector<8x8xf32>
    %cst_14 = arith.constant dense<0.000000e+00> : vector<8x128xf32>
    %27 = tpu.matmul %26, %25, %cst_14 {dimension_numbers = #tpu.dot_dimension_numbers<[1], [0], [0], [1], [0, 0, 1, 1], [], []>} : vector<8x8xf32>, vector<8x128xf32>, vector<8x128xf32> -> vector<8x128xf32>
    %c0_15 = arith.constant 0 : index
    %c2 = arith.constant 2 : index
    %28 = vector.load %arg4[%c0_15, %c2] : memref<8x4xf32, #tpu.memory_space<vmem>>, vector<8x1xf32>
    %c0_16 = arith.constant 0 : index
    %c3 = arith.constant 3 : index
    %29 = vector.load %arg4[%c0_16, %c3] : memref<8x4xf32, #tpu.memory_space<vmem>>, vector<8x1xf32>
    %cst_17 = arith.constant dense<0.000000e+00> : vector<8xf32>
    %30 = vector.multi_reduction <add>, %27, %cst_17 [1] : vector<8x128xf32> to vector<8xf32>
    %31 = vector.shape_cast %30 : vector<8xf32> to vector<8x1xf32>
    %cst_18 = arith.constant 1.280000e+02 : f32
    %32 = vector.broadcast %cst_18 : f32 to vector<8x1xf32>
    %33 = arith.divf %31, %32 : vector<8x1xf32>
    %34 = vector.broadcast %33 : vector<8x1xf32> to vector<8x128xf32>
    %35 = arith.subf %27, %34 : vector<8x128xf32>
    %36 = arith.mulf %35, %35 : vector<8x128xf32>
    %cst_19 = arith.constant dense<0.000000e+00> : vector<8xf32>
    %37 = vector.multi_reduction <add>, %36, %cst_19 [1] : vector<8x128xf32> to vector<8xf32>
    %38 = vector.shape_cast %37 : vector<8xf32> to vector<8x1xf32>
    %cst_20 = arith.constant 1.280000e+02 : f32
    %39 = vector.broadcast %cst_20 : f32 to vector<8x1xf32>
    %40 = arith.divf %38, %39 : vector<8x1xf32>
    %cst_21 = arith.constant 9.99999974E-6 : f32
    %41 = vector.broadcast %cst_21 : f32 to vector<8x1xf32>
    %42 = arith.addf %40, %41 : vector<8x1xf32>
    %43 = math.rsqrt %42 : vector<8x1xf32>
    %44 = arith.mulf %28, %43 : vector<8x1xf32>
    %45 = vector.broadcast %44 : vector<8x1xf32> to vector<8x128xf32>
    %46 = arith.mulf %35, %45 : vector<8x128xf32>
    %47 = vector.broadcast %29 : vector<8x1xf32> to vector<8x128xf32>
    %48 = arith.addf %46, %47 : vector<8x128xf32>
    %cst_22 = arith.constant 0.000000e+00 : f32
    %49 = vector.broadcast %cst_22 : f32 to vector<8x128xf32>
    %50 = arith.maximumf %48, %49 : vector<8x128xf32>
    %c0_23 = arith.constant 0 : index
    %c0_24 = arith.constant 0 : index
    %51 = vector.load %arg5[%c0_23, %c0_24] : memref<8x128xf32, #tpu.memory_space<vmem>>, vector<8x128xf32>
    tpu.vector_store %arg5[%c0_23, %c0_24], %50 {strides = array<i32>} : memref<8x128xf32, #tpu.memory_space<vmem>>, vector<8x128xf32>,
    return
  }
  func.func @transform_0(%arg0: i32) -> (i32, i32) {
    %c0_i32 = arith.constant 0 : i32
    %c0_i32_0 = arith.constant 0 : i32
    %c0_i32_1 = arith.constant 0 : i32
    return %c0_i32, %c0_i32_0 : i32, i32
  }
  func.func @transform_1(%arg0: i32) -> (i32, i32) {
    %c0_i32 = arith.constant 0 : i32
    %c0_i32_0 = arith.constant 0 : i32
    %c0_i32_1 = arith.constant 0 : i32
    return %c0_i32, %c0_i32_0 : i32, i32
  }
  func.func @transform_2(%arg0: i32) -> (i32, i32) {
    %c0_i32 = arith.constant 0 : i32
    %c0_i32_0 = arith.constant 0 : i32
    %c0_i32_1 = arith.constant 0 : i32
    return %c0_i32, %c0_i32_0 : i32, i32
  }
  func.func @transform_3(%arg0: i32) -> (i32, i32) {
    %c0_i32 = arith.constant 0 : i32
    %c0_i32_0 = arith.constant 0 : i32
    %c0_i32_1 = arith.constant 0 : i32
    return %c0_i32, %c0_i32_0 : i32, i32
  }
  func.func @transform_4(%arg0: i32) -> (i32, i32) {
    %c0_i32 = arith.constant 0 : i32
    %c0_i32_0 = arith.constant 0 : i32
    %c0_i32_1 = arith.constant 0 : i32
    return %c0_i32, %c0_i32_0 : i32, i32
  }
}

</mosaic_0001>

<bundles_post_ra>
// kernel: tile.9
= control target key start
LH: loop header
LB: loop body
LE: loop exit
PB: predicated region body
PF: predicated region fallthrough
CT: control target
= control target key end

     0   :  { %vm6_vm0 = vcmask 1043458   ;;  %s11_s6 = smov 3  ;;  %s14_s7 = smov 12  ;;  %vm8_vm1 = vcmask 31744   ;;  %vm20_vm2 = vcmask 294144   ;;  %vm32_vm3 = vcmask 261344   ;;  %s220_s0 = inlined_call_operand.vmem [shape: f32[4,9,4], index: 0, kind: input, shape index: {}]   ;;  %s221_s1 = inlined_call_operand.vmem [shape: f32[4,36], index: 1, kind: output, shape index: {}]  }
   0x1   :  { %v112_v0 = vld [vmem:[%s220_s0 + $0x8] ss:$16 sm:%s11_s6]   ;;  %s35_s12 = smov 3  ;;  %s38_s15 = smov 12  ;;  %vm44_vm4 = vcmask 228544   ;;  %vm56_vm5 = vcmask 195744  }
   0x2   :  { %v113_v1 = vld [vmem:[%s220_s0 + $0x8] ss:$16 sm:%s14_s7]   ;;  %v116_v3 = vld [vmem:[%s220_s0 + $0x6] ss:$16 sm:%s35_s12]   ;;  %s136_s16 = smov 32   ;;  %s23_s19 = smov 3 }
   0x3   :  { %v17_v2 = vsel %vm6_vm0, %v113_v1, %v112_v0  ;;  %v117_v4 = vld [vmem:[%s220_s0 + $0x6] ss:$16 sm:%s38_s15]   ;;  %s26_s20 = smov 12  ;;  %v114_v6 = vld [vmem:[%s220_s0 + $0x7] ss:$16 sm:%s23_s19]   ;;  %s47_s25 = smov 3 }
   0x4   :  { %18 = vrot.lane.b32.xlu0 %v17_v2, %s136_s16  ;;  %v41_v5 = vsel %vm6_vm0, %v117_v4, %v116_v3  ;;  %v115_v7 = vld [vmem:[%s220_s0 + $0x7] ss:$16 sm:%s26_s20]   ;;  %s137_s26 = smov 24   ;;  %s50_s29 = smov 12  ;;  %vm68_vm6 = vcmask 162944   ;;  %vm80_vm7 = vcmask 130144  }
   0x5   :  { %42 = vrot.lane.b32.xlu1 %v41_v5, %s137_s26  ;;  %v29_v8 = vsel %vm6_vm0, %v115_v7, %v114_v6  ;;  %v118_v9 = vld [vmem:[%s220_s0 + $0x5] ss:$16 sm:%s47_s25]   ;;  %s59_s3 = smov 3  ;;  %s62_s4 = smov 12  ;;  %vm92_vm8 = vcmask 97344   ;;  %vm104_vm9 = vcmask 64544  }
   0x6   :  { %v119_v10 = vld [vmem:[%s220_s0 + $0x5] ss:$16 sm:%s50_s29]   ;;  %s138_s5 = smov 28   ;;  %v120_v12 = vld [vmem:[%s220_s0 + $0x4] ss:$16 sm:%s59_s3]   ;;  %s71_s8 = smov 3 }
   0x7   :  { %v53_v11 = vsel %vm6_vm0, %v119_v10, %v118_v9  ;;  %v121_v13 = vld [vmem:[%s220_s0 + $0x4] ss:$16 sm:%s62_s4]   ;;  %v122_v14 = vld [vmem:[%s220_s0 + $0x3] ss:$16 sm:%s71_s8]   ;;  %s74_s13 = smov 12  ;;  %s139_s14 = smov 20  }
   0x8   :  { %30 = vrot.lane.b32.xlu0 %v29_v8, %s138_s5  ;;  %v65_v15 = vsel %vm6_vm0, %v121_v13, %v120_v12  ;;  %v123_v16 = vld [vmem:[%s220_s0 + $0x3] ss:$16 sm:%s74_s13]   ;;  %s83_s17 = smov 3  ;;  %s86_s18 = smov 12 }
   0x9   :  { %54 = vrot.lane.b32.xlu1 %v53_v11, %s139_s14  ;;  %v77_v17 = vsel %vm6_vm0, %v123_v16, %v122_v14  ;;  %v124_v18 = vld [vmem:[%s220_s0 + $0x2] ss:$16 sm:%s83_s17]   ;;  %s95_s23 = smov 3  ;;  %s140_s24 = smov 16  }
   0xa   :  { %v125_v19 = vld [vmem:[%s220_s0 + $0x2] ss:$16 sm:%s86_s18]   ;;  %v126_v20 = vld [vmem:[%s220_s0 + $0x1] ss:$16 sm:%s95_s23]   ;;  %s98_s27 = smov 12  ;;  %s2_s30 = smov 3 }
   0xb   :  { %v89_v21 = vsel %vm6_vm0, %v125_v19, %v124_v18  ;;  %v127_v22 = vld [vmem:[%s220_s0 + $0x1] ss:$16 sm:%s98_s27]   ;;  %s4_s2 = smov 12  ;;  %s141_s3 = smov 12   ;;  %v3_v23 = vld [vmem:[%s220_s0] ss:$16 sm:%s2_s30]  }
   0xc   :  { %66 = vrot.lane.b32.xlu0 %v65_v15, %s140_s24  ;;  %v101_v24 = vsel %vm6_vm0, %v127_v22, %v126_v20  ;;  %v5_v25 = vld [vmem:[%s220_s0] ss:$16 sm:%s4_s2]   ;;  %s142_s0 = smov 8   ;;  %s143_s8 = smov 4  }
   0xd   :  { %78 = vrot.lane.b32.xlu1 %v77_v17, %s141_s3  ;;  %v7_v26 = vsel %vm6_vm0, %v5_v25, %v3_v23 }
   0xe   :  { %9 = vst.msk [vmem:[#allocation0] sm:$0xf] %vm8_vm1, %v7_v26  }
  0x10   :  { %90 = vrot.lane.b32.xlu0 %v89_v21, %s142_s0 }
  0x11   :  { %102 = vrot.lane.b32.xlu1 %v101_v24, %s143_s8 }
  0x76   :  { %v19_v27 = vpop.permute.xlu0 %18  }
  0x77   :  { %21 = vst.msk [vmem:[#allocation0] sm:$0xf] %vm20_vm2, %v19_v27   ;;  %v43_v28 = vpop.permute.xlu1 %42  }
  0x7a   :  { %v31_v29 = vpop.permute.xlu0 %30  }
  0x7b   :  { %33 = vst.msk [vmem:[#allocation0] sm:$0xf] %vm32_vm3, %v31_v29   ;;  %v55_v30 = vpop.permute.xlu1 %54  }
  0x7c   :  { %45 = vst.msk [vmem:[#allocation0] sm:$0xf] %vm44_vm4, %v43_v28  }
  0x7d   :  { %57 = vst.msk [vmem:[#allocation0] sm:$0xf] %vm56_vm5, %v55_v30  }
  0x7e   :  { %v67_v31 = vpop.permute.xlu0 %66  }
  0x7f   :  { %69 = vst.msk [vmem:[#allocation0] sm:$0xf] %vm68_vm6, %v67_v31   ;;  %v79_v32 = vpop.permute.xlu1 %78  }
  0x80   :  { %81 = vst.msk [vmem:[#allocation0] sm:$0xf] %vm80_vm7, %v79_v32  }
  0x82   :  { %v91_v33 = vpop.permute.xlu0 %90  }
  0x83   :  { %93 = vst.msk [vmem:[#allocation0] sm:$0xf] %vm92_vm8, %v91_v33   ;;  %v103_v34 = vpop.permute.xlu1 %102  }
  0x84   :  { %105 = vst.msk [vmem:[#allocation0] sm:$0xf] %vm104_vm9, %v103_v34  }
  0x8b   :  { %v109_v35 = vld [vmem:[#allocation0] sm:$0xf] }
  0x8c   :  { %111 = vst [vmem:[%s221_s1] sm:$0xf] %v109_v35 }

// kernel: downsampling_forward.1
= control target key start
LH: loop header
LB: loop body
LE: loop exit
PB: predicated region body
PF: predicated region fallthrough
CT: control target
= control target key end

     0   :  { %v281_v0 = vmov 0.0|0.0   ;;  %vm282_vm0 = vmmov 0   ;;  %v283_v4 = vmov 0.0   ;;  %vm27_vm1 = vcmask 1043456   ;;  %s340_s0 = inlined_call_operand.vmem [shape: f32[36,128], index: 0, kind: input, shape index: {}]   ;;  %s341_s1 = inlined_call_operand.vmem [shape: f32[8,36], index: 1, kind: input, shape index: {}]   ;;  %s342_s3 = inlined_call_operand.vmem [shape: f32[8,4], index: 3, kind: input, shape index: {}]   ;;  %s343_s2 = inlined_call_operand.vmem [shape: f32[8,8], index: 2, kind: input, shape index: {}]   ;;  %s344_s4 = inlined_call_operand.vmem [shape: f32[8,128], index: 4, kind: output, shape index: {}]  }
   0x1   :  { %259 = vmatprep.subr.bf16.mxu0 %v281_v0  ;;  %v18_v1 = vld [vmem:[%s340_s0] sm:$0xff]  ;;  %v19_v2 = vld [vmem:[%s340_s0 + $0x8] sm:$0xff]  ;;  %v20_v3 = vld [vmem:[%s340_s0 + $0x10] sm:$0xff]  ;;  %251 = vmatprep.mubr.msk.f32.mxu0 %vm282_vm0, %v283_v4  ;;  %vm23_vm2 = vcmask 293888   ;;  %v284_v16 = vmov 0   ;;  %v285_v23 = vmov 1  }
   0x2   :  { %v260_v5 = vpack.c.bf16 %v19_v2, %v18_v1  ;;  %v21_v6 = vld [vmem:[%s340_s0 + $0x18] sm:$0xff]  ;;  %254 = vmatprep.subr.mxu1 %v283_v4  ;;  %256 = vmatprep.mubr.msk.f32.mxu1 %vm282_vm0, %v283_v4  ;;  %v22_v8 = vld [vmem:[%s340_s0 + $0x20] sm:$0xf]  ;;  %vm128_vm3 = vcmask 64512   ;;  %v286_v36 = vmov 2   ;;  %v287_v37 = vmov 3  }
   0x3   :  { %v263_v7 = vpack.c.bf16 %v21_v6, %v20_v3  ;;  %v17_v9 = vld [vmem:[%s341_s1] sm:$0xff]  ;;  %272 = vset.pattern.permute.xlu1 %v284_v16  ;;  %274 = vset.pattern.permute.xlu0 %v286_v36 }
   0x4   :  { %261 = vmatpush3.bf16.msra.mxu0 %v260_v5  ;;  %v101_v20 = vld [vmem:[%s342_s3] sm:$0xff] }
   0x5   :  { %262 = vmatprep.subr.bf16.mxu0 %v281_v0  ;;  %v127_v29 = vld [vmem:[%s343_s2] sm:$0xff] }
   0x8   :  { %264 = vmatpush3.bf16.msra.mxu0 %v263_v7 }
   0x9   :  { %249 = vmatprep.subr.mxu0 %v283_v4 }
   0xc   :  { %250 = vmatpush3.msk.msra.mxu0 %vm27_vm1, %v22_v8 }
   0xd   :  { %252 = vmatmul.mubr.msk.f32.vlgmr.msra.gmra.mrb[0].mxu0 %vm23_vm2, %v17_v9 }
  0xe0   :  { %v97_v10 = vpop.f32.mrb[0].mxu0 }
  0xe1   :  { %102 = vadd.xlane.f32.xlu0 %v97_v10  ;;  %v253_v11 = vpop.f32.mrb[1].mxu0 }
 0x16e   :  { %v103_v12 = vpop.xlane.xlu0 %102 }
 0x16f   :  { %v105_v13 = vmul.f32 0.0078125, %v103_v12 }
 0x171   :  { %v106_v14 = vsub.f32 %v97_v10, %v105_v13 }
 0x173   :  { %v107_v15 = vmul.f32 %v106_v14, %v106_v14 }
 0x175   :  { %108 = vadd.xlane.f32.xlu0 %v107_v15 }
 0x202   :  { %v109_v17 = vpop.xlane.xlu0 %108 }
 0x203   :  { %v110_v18 = vmul.f32 0.0078125, %v109_v17 }
 0x205   :  { %v111_v19 = vadd.f32 1e-05, %v110_v18 }
 0x207   :  { %277 = vrsqrt.f32 %v111_v19 }
 0x211   :  { %v278_v21 = vpop.eup %277 }
 0x212   :  { %v113_v22 = vmul.f32 %v278_v21, %v101_v20 }
 0x214   :  { %116 = vperm.xlu1 %272, %v113_v22  }
 0x218   :  { %273 = vset.pattern.permute.xlu1 %v285_v23 }
 0x219   :  { %122 = vperm.xlu1 %273, %v101_v20  }
 0x21d   :  { %275 = vset.pattern.permute.xlu1 %v287_v37 }
 0x293   :  { %v117_v24 = vpop.permute.xlu1 %116 }
 0x294   :  { %v119_v25 = vmul.f32 %v117_v24, %v106_v14 }
 0x298   :  { %v123_v26 = vpop.permute.xlu1 %122 }
 0x299   :  { %v125_v27 = vadd.f32 %v123_v26, %v119_v25 }
 0x29b   :  { %v126_v28 = vmax.f32 %v125_v27, 0.0 }
 0x29d   :  { %255 = vmatpush3.msra.mxu1 %v126_v28 }
 0x29e   :  { %257 = vmatmul.mubr.msk.f32.vlgmr.msra.gmra.mrb[0].mxu1 %vm128_vm3, %v127_v29 }
 0x371   :  { %v198_v30 = vpop.f32.mrb[0].mxu1 }
 0x372   :  { %202 = vadd.xlane.f32.xlu0 %v198_v30  ;;  %v258_v31 = vpop.f32.mrb[1].mxu1 }
 0x3ff   :  { %v203_v32 = vpop.xlane.xlu0 %202 }
 0x400   :  { %v204_v33 = vmul.f32 0.0078125, %v203_v32 }
 0x402   :  { %v205_v34 = vsub.f32 %v198_v30, %v204_v33 }
 0x404   :  { %v206_v35 = vmul.f32 %v205_v34, %v205_v34 }
 0x406   :  { %207 = vadd.xlane.f32.xlu1 %v206_v35 }
 0x417   :  { %220 = vperm.xlu1 %275, %v101_v20  }
 0x493   :  { %v208_v38 = vpop.xlane.xlu1 %207 }
 0x494   :  { %v209_v39 = vmul.f32 0.0078125, %v208_v38 }
 0x496   :  { %v210_v40 = vadd.f32 1e-05, %v209_v39 }
 0x497   :  { %v221_v44 = vpop.permute.xlu1 %220 }
 0x498   :  { %279 = vrsqrt.f32 %v210_v40 }
 0x4a2   :  { %v280_v41 = vpop.eup %279 }
 0x4a3   :  { %v212_v42 = vmul.f32 %v280_v41, %v101_v20 }
 0x4a5   :  { %215 = vperm.xlu0 %274, %v212_v42  }
 0x4a9   :  { %276 = vset.pattern.permute.xlu0 %v287_v37 }
 0x524   :  { %v216_v43 = vpop.permute.xlu0 %215 }
 0x525   :  { %v218_v45 = vmul.f32 %v216_v43, %v205_v34 }
 0x527   :  { %v223_v46 = vadd.f32 %v221_v44, %v218_v45 }
 0x529   :  { %v224_v47 = vmax.f32 %v223_v46, 0.0 }
 0x52b   :  { %225 = vst [vmem:[%s344_s4] sm:$0xff] %v224_v47 }

</bundles_post_ra>
